<compile_context>
chip_gen: v5e
topology: v5e:2x2
jax: 0.10.0
libtpu: 0.0.40
codegen_flags: <defaults>
</compile_context>

<pallas_src>
import functools

import jax
import jax.numpy as jnp
from jax.experimental import pallas as pl
from jax.experimental.pallas import tpu as pltpu

EPS = 1e-5
NEG_SLOPE = 0.01
IN_F, H1, H2 = 38, 128, 64
DEFAULT_TB = 1024  # batch tile; fits comfortably in scoped VMEM on v5e/v6e/v7x


# --------------------------------------------------------------------------
# Kernel: one batch tile (TB, 38) -> (TB, 1)
# --------------------------------------------------------------------------
def actor_kernel(x_ref, w1_ref, b1_ref, w2_ref, b2_ref, w3_ref, b3_ref, out_ref):
    x = x_ref[...]                                                      # (TB, 38)

    # fc1 (+ folded bn1) + leaky_relu          (dropout1 = identity in eval)
    h = jnp.dot(x, w1_ref[...], preferred_element_type=jnp.float32) + b1_ref[...]
    h = jnp.where(h >= 0, h, NEG_SLOPE * h)                             # (TB, 128)

    # fc2 (+ folded bn2) + leaky_relu          (dropout2 = identity in eval)
    h = jnp.dot(h, w2_ref[...], preferred_element_type=jnp.float32) + b2_ref[...]
    h = jnp.where(h >= 0, h, NEG_SLOPE * h)                             # (TB, 64)

    # fc3 (out_features=1): VPU multiply + lane reduction instead of an
    # MXU matmul with a single output column.
    z = jnp.sum(h * w3_ref[...], axis=-1, keepdims=True) + b3_ref[...]  # (TB, 1)
    out_ref[...] = 1.0 / (1.0 + jnp.exp(-z))


# --------------------------------------------------------------------------
# Parameter init (mirrors PyTorch defaults) and one-time preprocessing
# --------------------------------------------------------------------------
def init_params(key):
    """PyTorch-style init. BN running stats / affine are randomized here so the
    correctness test actually exercises the BN fold."""
    def linear(key, fan_in, fan_out):
        kw, kb = jax.random.split(key)
        bound = 1.0 / jnp.sqrt(fan_in)
        w = jax.random.uniform(kw, (fan_out, fan_in), jnp.float32, -bound, bound)
        b = jax.random.uniform(kb, (fan_out,), jnp.float32, -bound, bound)
        return w, b

    def bn(key, n):
        k1, k2, k3, k4 = jax.random.split(key, 4)
        return dict(
            gamma=jax.random.uniform(k1, (n,), jnp.float32, 0.5, 1.5),
            beta=0.1 * jax.random.normal(k2, (n,), jnp.float32),
            mean=0.1 * jax.random.normal(k3, (n,), jnp.float32),
            var=jax.random.uniform(k4, (n,), jnp.float32, 0.5, 1.5),
        )

    k1, k2, k3, k4, k5 = jax.random.split(key, 5)
    w1, b1 = linear(k1, IN_F, H1)
    w2, b2 = linear(k2, H1, H2)
    w3, b3 = linear(k3, H2, 1)
    return dict(w1=w1, b1=b1, bn1=bn(k4, H1),
                w2=w2, b2=b2, bn2=bn(k5, H2),
                w3=w3, b3=b3)


def prepare_params(p):
    """One-time: fold eval-mode BatchNorm into the preceding Linear and
    pre-transpose/reshape everything into the kernel's layout."""
    def fold(w, b, s):
        scale = s["gamma"] / jnp.sqrt(s["var"] + EPS)          # (out,)
        w_f = w * scale[:, None]                               # (out, in)
        b_f = (b - s["mean"]) * scale + s["beta"]              # (out,)
        return w_f, b_f

    w1f, b1f = fold(p["w1"], p["b1"], p["bn1"])
    w2f, b2f = fold(p["w2"], p["b2"], p["bn2"])
    return dict(
        w1=jnp.asarray(w1f.T, jnp.float32),                    # (38, 128)
        b1=jnp.asarray(b1f.reshape(1, H1), jnp.float32),       # (1, 128)
        w2=jnp.asarray(w2f.T, jnp.float32),                    # (128, 64)
        b2=jnp.asarray(b2f.reshape(1, H2), jnp.float32),       # (1, 64)
        w3=jnp.asarray(p["w3"].reshape(1, H2), jnp.float32),   # (1, 64) row
        b3=jnp.asarray(p["b3"].reshape(1, 1), jnp.float32),    # (1, 1)
    )


# --------------------------------------------------------------------------
# Wrapper: batch-gridded pallas_call with VMEM-resident weights
# --------------------------------------------------------------------------
@functools.partial(jax.jit, static_argnames=("tb",))
def actor_forward(x, q, tb=DEFAULT_TB):
    """Fused ActorNet2 forward (eval mode). `q` = prepare_params(params)."""
    x = x.astype(jnp.float32)
    B = x.shape[0]

    # Batch tile: multiple of 8 sublanes, no bigger than needed.
    tb = max(8, min(tb, ((B + 7) // 8) * 8))
    tb = (tb // 8) * 8
    b_pad = ((B + tb - 1) // tb) * tb
    if b_pad != B:
        x = jnp.pad(x, ((0, b_pad - B), (0, 0)))

    grid = (b_pad // tb,)
    const = lambda i: (0, 0)  # weights/biases: same block every step -> VMEM-resident

    out = pl.pallas_call(
        actor_kernel,
        out_shape=jax.ShapeDtypeStruct((b_pad, 1), jnp.float32),
        grid=grid,
        in_specs=[
            pl.BlockSpec((tb, IN_F), lambda i: (i, 0)),   # x tile
            pl.BlockSpec((IN_F, H1), const),              # w1
            pl.BlockSpec((1, H1), const),                 # b1
            pl.BlockSpec((H1, H2), const),                # w2
            pl.BlockSpec((1, H2), const),                 # b2
            pl.BlockSpec((1, H2), const),                 # w3 row
            pl.BlockSpec((1, 1), const),                  # b3
        ],
        out_specs=pl.BlockSpec((tb, 1), lambda i: (i, 0)),
        compiler_params=pltpu.CompilerParams(
            dimension_semantics=("parallel",),            # megacore on v7x
        ),
    )(x, q["w1"], q["b1"], q["w2"], q["b2"], q["w3"], q["b3"])

    return out[:B]


# --------------------------------------------------------------------------
# Pure-JAX reference (unfolded, matches PyTorch eval-mode math)
# --------------------------------------------------------------------------
def actor_forward_ref(x, p):
    def bn(h, s):
        return (h - s["mean"]) / jnp.sqrt(s["var"] + EPS) * s["gamma"] + s["beta"]
    h = x @ p["w1"].T + p["b1"]
    h = bn(h, p["bn1"])
    h = jnp.where(h >= 0, h, NEG_SLOPE * h)
    h = h @ p["w2"].T + p["b2"]
    h = bn(h, p["bn2"])
    h = jnp.where(h >= 0, h, NEG_SLOPE * h)
    z = h @ p["w3"].T + p["b3"]
    return jax.nn.sigmoid(z)


if __name__ == "__main__":
    key = jax.random.PRNGKey(0)
    kx, kp = jax.random.split(key)

    B = 8
    x = jax.random.normal(kx, (B, IN_F), dtype=jnp.float32)
    params = init_params(kp)
    prepared = prepare_params(params)   # one-time, model-load-time work

    out = actor_forward(x, prepared)
    out = jax.block_until_ready(out)

    ref = actor_forward_ref(x, params)
    assert out.shape == (B, 1), out.shape
    assert jnp.allclose(out, ref, atol=1e-5, rtol=1e-4), (out, ref)

    print("KERNEL_OK")
</pallas_src>

<mosaic_0001>
module attributes {stable_mosaic.version = 11 : i64} {
  func.func @actor_kernel(%arg0: i32, %arg1: memref<8x38xf32, #tpu.memory_space<vmem>>, %arg2: memref<38x128xf32, #tpu.memory_space<vmem>>, %arg3: memref<1x128xf32, #tpu.memory_space<vmem>>, %arg4: memref<128x64xf32, #tpu.memory_space<vmem>>, %arg5: memref<1x64xf32, #tpu.memory_space<vmem>>, %arg6: memref<1x64xf32, #tpu.memory_space<vmem>>, %arg7: memref<1x1xf32, #tpu.memory_space<vmem>>, %arg8: memref<8x1xf32, #tpu.memory_space<vmem>>) attributes {dimension_semantics = [#tpu.dimension_semantics<parallel>], iteration_bounds = array<i64: 1>, scalar_prefetch = 0 : i64, scratch_operands = 0 : i64, tpu.core_type = #tpu.core_type<tc>, window_params = [{transform_indices = @transform_0, window_bounds = array<i64: 8, 38>}, {pipeline_mode = #tpu.pipeline_mode<synchronous>, transform_indices = @transform_1, window_bounds = array<i64: 38, 128>}, {pipeline_mode = #tpu.pipeline_mode<synchronous>, transform_indices = @transform_2, window_bounds = array<i64: 1, 128>}, {pipeline_mode = #tpu.pipeline_mode<synchronous>, transform_indices = @transform_3, window_bounds = array<i64: 128, 64>}, {pipeline_mode = #tpu.pipeline_mode<synchronous>, transform_indices = @transform_4, window_bounds = array<i64: 1, 64>}, {pipeline_mode = #tpu.pipeline_mode<synchronous>, transform_indices = @transform_5, window_bounds = array<i64: 1, 64>}, {pipeline_mode = #tpu.pipeline_mode<synchronous>, transform_indices = @transform_6, window_bounds = array<i64: 1, 1>}, {transform_indices = @transform_7, window_bounds = array<i64: 8, 1>}]} {
    %c0 = arith.constant 0 : index
    %c0_0 = arith.constant 0 : index
    %0 = vector.load %arg1[%c0, %c0_0] : memref<8x38xf32, #tpu.memory_space<vmem>>, vector<8x38xf32>
    %c0_1 = arith.constant 0 : index
    %c0_2 = arith.constant 0 : index
    %1 = vector.load %arg2[%c0_1, %c0_2] : memref<38x128xf32, #tpu.memory_space<vmem>>, vector<38x128xf32>
    %cst = arith.constant dense<0.000000e+00> : vector<8x128xf32>
    %2 = tpu.matmul %0, %1, %cst {dimension_numbers = #tpu.dot_dimension_numbers<[1], [0], [0], [1], [0, 0, 1, 1], [], []>} : vector<8x38xf32>, vector<38x128xf32>, vector<8x128xf32> -> vector<8x128xf32>
    %c0_3 = arith.constant 0 : index
    %c0_4 = arith.constant 0 : index
    %3 = vector.load %arg3[%c0_3, %c0_4] : memref<1x128xf32, #tpu.memory_space<vmem>>, vector<1x128xf32>
    %4 = vector.broadcast %3 : vector<1x128xf32> to vector<8x128xf32>
    %5 = arith.addf %2, %4 : vector<8x128xf32>
    %cst_5 = arith.constant 0.000000e+00 : f32
    %6 = vector.broadcast %cst_5 : f32 to vector<8x128xf32>
    %7 = arith.cmpf oge, %5, %6 : vector<8x128xf32>
    %cst_6 = arith.constant 0.00999999977 : f32
    %8 = vector.broadcast %cst_6 : f32 to vector<8x128xf32>
    %9 = arith.mulf %8, %5 : vector<8x128xf32>
    %10 = arith.select %7, %5, %9 : vector<8x128xi1>, vector<8x128xf32>
    %c0_7 = arith.constant 0 : index
    %c0_8 = arith.constant 0 : index
    %11 = vector.load %arg4[%c0_7, %c0_8] : memref<128x64xf32, #tpu.memory_space<vmem>>, vector<128x64xf32>
    %cst_9 = arith.constant dense<0.000000e+00> : vector<8x64xf32>
    %12 = tpu.matmul %10, %11, %cst_9 {dimension_numbers = #tpu.dot_dimension_numbers<[1], [0], [0], [1], [0, 0, 1, 1], [], []>} : vector<8x128xf32>, vector<128x64xf32>, vector<8x64xf32> -> vector<8x64xf32>
    %c0_10 = arith.constant 0 : index
    %c0_11 = arith.constant 0 : index
    %13 = vector.load %arg5[%c0_10, %c0_11] : memref<1x64xf32, #tpu.memory_space<vmem>>, vector<1x64xf32>
    %14 = vector.broadcast %13 : vector<1x64xf32> to vector<8x64xf32>
    %15 = arith.addf %12, %14 : vector<8x64xf32>
    %cst_12 = arith.constant 0.000000e+00 : f32
    %16 = vector.broadcast %cst_12 : f32 to vector<8x64xf32>
    %17 = arith.cmpf oge, %15, %16 : vector<8x64xf32>
    %cst_13 = arith.constant 0.00999999977 : f32
    %18 = vector.broadcast %cst_13 : f32 to vector<8x64xf32>
    %19 = arith.mulf %18, %15 : vector<8x64xf32>
    %20 = arith.select %17, %15, %19 : vector<8x64xi1>, vector<8x64xf32>
    %c0_14 = arith.constant 0 : index
    %c0_15 = arith.constant 0 : index
    %21 = vector.load %arg6[%c0_14, %c0_15] : memref<1x64xf32, #tpu.memory_space<vmem>>, vector<1x64xf32>
    %22 = vector.broadcast %21 : vector<1x64xf32> to vector<8x64xf32>
    %23 = arith.mulf %20, %22 : vector<8x64xf32>
    %cst_16 = arith.constant dense<0.000000e+00> : vector<8xf32>
    %24 = vector.multi_reduction <add>, %23, %cst_16 [1] : vector<8x64xf32> to vector<8xf32>
    %25 = vector.shape_cast %24 : vector<8xf32> to vector<8x1xf32>
    %c0_17 = arith.constant 0 : index
    %c0_18 = arith.constant 0 : index
    %26 = vector.load %arg7[%c0_17, %c0_18] : memref<1x1xf32, #tpu.memory_space<vmem>>, vector<1x1xf32>
    %27 = vector.broadcast %26 : vector<1x1xf32> to vector<8x1xf32>
    %28 = arith.addf %25, %27 : vector<8x1xf32>
    %cst_19 = arith.constant 0.000000e+00 : f32
    %29 = vector.broadcast %cst_19 : f32 to vector<8x1xf32>
    %30 = arith.subf %29, %28 : vector<8x1xf32>
    %31 = math.exp %30 : vector<8x1xf32>
    %cst_20 = arith.constant 1.000000e+00 : f32
    %32 = vector.broadcast %cst_20 : f32 to vector<8x1xf32>
    %33 = arith.addf %32, %31 : vector<8x1xf32>
    %cst_21 = arith.constant 1.000000e+00 : f32
    %34 = vector.broadcast %cst_21 : f32 to vector<8x1xf32>
    %35 = arith.divf %34, %33 : vector<8x1xf32>
    %c0_22 = arith.constant 0 : index
    %c0_23 = arith.constant 0 : index
    %36 = vector.load %arg8[%c0_22, %c0_23] : memref<8x1xf32, #tpu.memory_space<vmem>>, vector<8x1xf32>
    tpu.vector_store %arg8[%c0_22, %c0_23], %35 {strides = array<i32>} : memref<8x1xf32, #tpu.memory_space<vmem>>, vector<8x1xf32>,
    return
  }
  func.func @transform_0(%arg0: i32) -> (i32, i32) {
    %c0_i32 = arith.constant 0 : i32
    %c0_i32_0 = arith.constant 0 : i32
    return %arg0, %c0_i32 : i32, i32
  }
  func.func @transform_1(%arg0: i32) -> (i32, i32) {
    %c0_i32 = arith.constant 0 : i32
    %c0_i32_0 = arith.constant 0 : i32
    %c0_i32_1 = arith.constant 0 : i32
    return %c0_i32, %c0_i32_0 : i32, i32
  }
  func.func @transform_2(%arg0: i32) -> (i32, i32) {
    %c0_i32 = arith.constant 0 : i32
    %c0_i32_0 = arith.constant 0 : i32
    %c0_i32_1 = arith.constant 0 : i32
    return %c0_i32, %c0_i32_0 : i32, i32
  }
  func.func @transform_3(%arg0: i32) -> (i32, i32) {
    %c0_i32 = arith.constant 0 : i32
    %c0_i32_0 = arith.constant 0 : i32
    %c0_i32_1 = arith.constant 0 : i32
    return %c0_i32, %c0_i32_0 : i32, i32
  }
  func.func @transform_4(%arg0: i32) -> (i32, i32) {
    %c0_i32 = arith.constant 0 : i32
    %c0_i32_0 = arith.constant 0 : i32
    %c0_i32_1 = arith.constant 0 : i32
    return %c0_i32, %c0_i32_0 : i32, i32
  }
  func.func @transform_5(%arg0: i32) -> (i32, i32) {
    %c0_i32 = arith.constant 0 : i32
    %c0_i32_0 = arith.constant 0 : i32
    %c0_i32_1 = arith.constant 0 : i32
    return %c0_i32, %c0_i32_0 : i32, i32
  }
  func.func @transform_6(%arg0: i32) -> (i32, i32) {
    %c0_i32 = arith.constant 0 : i32
    %c0_i32_0 = arith.constant 0 : i32
    %c0_i32_1 = arith.constant 0 : i32
    return %c0_i32, %c0_i32_0 : i32, i32
  }
  func.func @transform_7(%arg0: i32) -> (i32, i32) {
    %c0_i32 = arith.constant 0 : i32
    %c0_i32_0 = arith.constant 0 : i32
    return %arg0, %c0_i32 : i32, i32
  }
}

</mosaic_0001>

<bundles_post_ra>
// kernel: actor_forward.1
= control target key start
LH: loop header
LB: loop body
LE: loop exit
PB: predicated region body
PF: predicated region fallthrough
CT: control target
= control target key end

     0   :  { %vm42_vm0 = vcmask 1045504   ;;  %vm38_vm1 = vcmask 310272   ;;  %vm117_vm4 = vcmask 523264   ;;  %vm145_vm8 = vcmask 7168   ;;  %s282_s1 = inlined_call_operand.vmem [shape: f32[38,128], index: 1, kind: input, shape index: {}]   ;;  %s283_s3 = inlined_call_operand.vmem [shape: f32[128,64], index: 3, kind: input, shape index: {}]   ;;  %s284_s0 = inlined_call_operand.vmem [shape: f32[8,38], index: 0, kind: input, shape index: {}]   ;;  %s285_s2 = inlined_call_operand.vmem [shape: f32[1,128], index: 2, kind: input, shape index: {}]   ;;  %s286_s4 = inlined_call_operand.vmem [shape: f32[1,64], index: 4, kind: input, shape index: {}]   ;;  %s287_s5 = inlined_call_operand.vmem [shape: f32[1,64], index: 5, kind: input, shape index: {}]   ;;  %s288_s6 = inlined_call_operand.<no memory space> [shape: f32[1,1], index: 6, kind: input, shape index: {}]   ;;  %s289_s7 = inlined_call_operand.vmem [shape: f32[8,1], index: 7, kind: output, shape index: {}]  }
   0x1   :  { %v33_v0 = vld [vmem:[%s282_s1 + $0x20] sm:$0x3f]  ;;  %v32_v1 = vld [vmem:[%s282_s1 + $0x18] sm:$0xff]  ;;  %v31_v2 = vld [vmem:[%s282_s1 + $0x10] sm:$0xff]  ;;  %v12_v27 = vstv %s288_s6 }
   0x2   :  { %151 = vmatpush.msk.msra.mxu0 %vm42_vm0, %v33_v0  ;;  %v84_v3 = vld [vmem:[%s283_s3 + $0x78] sm:$0xff]  ;;  %v83_v4 = vld [vmem:[%s283_s3 + $0x70] sm:$0xff]  ;;  %v30_v5 = vld [vmem:[%s282_s1 + $0x8] sm:$0xff]  ;;  %13 = vst [vmem:[#allocation2] sm:$0x1] %v12_v27 }
   0x3   :  { %89 = vmatpush.msra.mxu1 %v84_v3  ;;  %v82_v6 = vld [vmem:[%s283_s3 + $0x68] sm:$0xff]  ;;  %v29_v7 = vld [vmem:[%s282_s1] sm:$0xff]  ;;  %v80_v10 = vld [vmem:[%s283_s3 + $0x58] sm:$0xff] }
   0x4   :  { %58 = vmatpush.msra.mxu0 %v32_v1  ;;  %v81_v8 = vld [vmem:[%s283_s3 + $0x60] sm:$0xff]  ;;  %v79_v11 = vld [vmem:[%s283_s3 + $0x50] sm:$0xff]  ;;  %v78_v12 = vld [vmem:[%s283_s3 + $0x48] sm:$0xff] }
   0x5   :  { %90 = vmatpush.msra.mxu1 %v83_v4  ;;  %v28_v9 = vld [vmem:[%s284_s0] sm:$0xff]  ;;  %v76_v14 = vld [vmem:[%s283_s3 + $0x38] sm:$0xff]  ;;  %v75_v15 = vld [vmem:[%s283_s3 + $0x30] sm:$0xff] }
   0x6   :  { %59 = vmatpush.msra.mxu0 %v31_v2  ;;  %v77_v13 = vld [vmem:[%s283_s3 + $0x40] sm:$0xff]  ;;  %v74_v16 = vld [vmem:[%s283_s3 + $0x28] sm:$0xff]  ;;  %v72_v18 = vld [vmem:[%s283_s3 + $0x18] sm:$0xff] }
   0x7   :  { %91 = vmatpush.msra.mxu1 %v82_v6  ;;  %v73_v17 = vld [vmem:[%s283_s3 + $0x20] sm:$0xff]  ;;  %v71_v19 = vld [vmem:[%s283_s3 + $0x10] sm:$0xff]  ;;  %v70_v20 = vld [vmem:[%s283_s3 + $0x8] sm:$0xff] }
   0x8   :  { %60 = vmatpush.msra.mxu0 %v30_v5  ;;  %v69_v21 = vld [vmem:[%s283_s3] sm:$0xff] }
   0x9   :  { %92 = vmatpush.msra.mxu1 %v81_v8  ;;  %v153_v22 = vld [vmem:[%s285_s2] ss:$0 sm:$0xff] }
   0xa   :  { %61 = vmatpush.msra.mxu0 %v29_v7  ;;  %v154_v28 = vld [vmem:[%s286_s4] ss:$0 sm:$0xff] }
   0xb   :  { %152 = vmatmul.msk.f32.vlgmr.msra.gmra.mxu0 %vm38_vm1, %v28_v9  ;;  %93 = vmatpush.msra.mxu1 %v80_v10  ;;  %v155_v31 = vld [vmem:[%s287_s5] ss:$0 sm:$0xff] }
   0xc   :  { %v156_v36 = vld [vmem:[#allocation2] ss:$0 sm:$0xff] }
   0xd   :  { %94 = vmatpush.msra.mxu1 %v79_v11 }
   0xf   :  { %95 = vmatpush.msra.mxu1 %v78_v12 }
  0x11   :  { %96 = vmatpush.msra.mxu1 %v77_v13 }
  0x13   :  { %97 = vmatpush.msra.mxu1 %v76_v14 }
  0x15   :  { %98 = vmatpush.msra.mxu1 %v75_v15 }
  0x17   :  { %99 = vmatpush.msra.mxu1 %v74_v16 }
  0x19   :  { %100 = vmatpush.msra.mxu1 %v73_v17 }
  0x1b   :  { %101 = vmatpush.msra.mxu1 %v72_v18 }
  0x1d   :  { %102 = vmatpush.msra.mxu1 %v71_v19 }
  0x1f   :  { %103 = vmatpush.msra.mxu1 %v70_v20 }
  0x21   :  { %104 = vmatpush.msra.mxu1 %v69_v21 }
  0x88   :  { %v63_v23 = vpop.f32.mrf.mxu0 }
  0x89   :  { %v64_v24 = vadd.f32 %v153_v22, %v63_v23 }
  0x8b   :  { %vm66_vm2 = vcmp.ge.f32.partialorder %v64_v24, 0.0  ;;  %v67_v25 = vmul.f32 0.01, %v64_v24 }
  0x8d   :  { %v68_v26 = vsel %vm66_vm2, %v64_v24, %v67_v25 }
  0x8e   :  { %105 = vmatmul.f32.vlgmr.msra.gmra.mxu1 %v68_v26 }
 0x10b   :  { %v106_v29 = vpop.f32.mrf.mxu1 }
 0x10c   :  { %v107_v30 = vadd.f32 %v154_v28, %v106_v29 }
 0x10e   :  { %v110_v32 = vmul.f32 0.01, %v107_v30  ;;  %vm109_vm3 = vcmp.ge.f32.partialorder %v107_v30, 0.0 }
 0x110   :  { %v111_v33 = vsel %vm109_vm3, %v107_v30, %v110_v32 }
 0x111   :  { %v116_v34 = vmul.f32 %v155_v31, %v111_v33 }
 0x113   :  { %v118_v35 = vsel %vm117_vm4, %v116_v34, 0.0 }
 0x114   :  { %119 = vadd.xlane.f32.xlu0 %v118_v35 }
 0x187   :  { %v120_v37 = vpop.xlane.xlu0 %119 }
 0x188   :  { %v125_v38 = vadd.f32 %v156_v36, %v120_v37 }
 0x18a   :  { %v126_v39 = vsub.f32 0.0, %v125_v38 }
 0x18c   :  { %v127_v40 = vmul.f32 1.442695, %v126_v39 }
 0x18e   :  { %157 = vpow2.f32 %v127_v40 }
 0x194   :  { %v158_v41 = vpop.eup %157 }
 0x195   :  { %v129_v42 = vadd.f32 1.0, %v158_v41 }
 0x197   :  { %159 = vrcp.f32 %v129_v42  ;;  %v141_v46 = vand.u32 2147483648, %v129_v42  ;;  %v139_v48 = vand.u32 2147483647, %v129_v42  ;;  %vm135_vm6 = vweird.f32 %v129_v42 }
 0x199   :  { %v142_v50 = vor.u32 1.1754944e-38, %v141_v46  ;;  %vm140_vm9 = vcmp.eq.f32.partialorder %v139_v48, 8.507059e+37 }
 0x19d   :  { %v160_v43 = vpop.eup %159 }
 0x19e   :  { %v131_v44 = vmul.f32 %v160_v43, %v129_v42  ;;  %vm136_vm5 = vweird.f32 %v160_v43 }
 0x19f   :  { %vm137_vm7 = vmor %vm135_vm6, %vm136_vm5 }
 0x1a0   :  { %v132_v45 = vsub.f32 1.0, %v131_v44 }
 0x1a2   :  { %v133_v47 = vmul.f32 %v160_v43, %v132_v45 }
 0x1a4   :  { %v134_v49 = vadd.f32 %v160_v43, %v133_v47 }
 0x1a6   :  { %v138_v51 = vsel %vm137_vm7, %v160_v43, %v134_v49 }
 0x1a7   :  { %v143_v52 = vsel %vm140_vm9, %v142_v50, %v138_v51 }
 0x1a8   :  { %146 = vst.msk [vmem:[%s289_s7] sm:$0xff] %vm145_vm8, %v143_v52 }

</bundles_post_ra>
